<compile_context>
chip_gen: v7x
topology: tpu7x:2x2x1
jax: 0.10.0
libtpu: 0.0.40
codegen_flags: <defaults>
</compile_context>

<pallas_src>
import functools

import jax
import jax.numpy as jnp
import numpy as np
from jax.experimental import pallas as pl
from jax.experimental.pallas import tpu as pltpu

LANE = 128
BN_EPS = 1e-5


def _round_up(n, m=LANE):
    return ((n + m - 1) // m) * m


def _pad_vec(v, size):
    v = v.reshape(-1)
    return jnp.pad(v, (0, size - v.shape[0]))


def _pad2(m, rows, cols):
    return jnp.pad(m, ((0, rows - m.shape[0]), (0, cols - m.shape[1])))


# ------------------------------ Pallas kernel -------------------------------

def icarl_fused_kernel(x_ref, wc_ref, vec_ref, w1_ref, w2_ref, o_ref,
                       *, batch, hw, matmul_dtype):
    """Entire forward pass in one single-block invocation (everything VMEM-resident).

    x_ref:   (B*H*W, Kp)  im2col'd, zero-padded input patches
    wc_ref:  (Kp, Cp)     conv3x3 weight as matmul matrix (zero-padded)
    vec_ref: (8, 128)     packed vectors: row0 conv bias, row1 fc1 bias,
                          row2 BN gamma, row3 BN beta (rows 4-7 zero)
    w1_ref:  (Cp, Fp)     feature_extractor.fc weight (Linear in_fc -> F)
    w2_ref:  (Fp, Np)     self.fc weight (no bias), zero-padded
    o_ref:   (B, Np)      padded logits (lane-dense store); sliced to n_classes outside
    """
    bc = vec_ref[0:1, :]
    b1 = vec_ref[1:2, :]
    g = vec_ref[2:3, :]
    be = vec_ref[3:4, :]

    # conv3x3 as one (B*H*W, Kp) @ (Kp, Cp) matmul, + bias + ReLU (f32 elementwise).
    p = jnp.dot(x_ref[...].astype(matmul_dtype), wc_ref[...].astype(matmul_dtype),
                preferred_element_type=jnp.float32)
    p = jnp.maximum(p + bc, 0.0)                                      # (B*H*W, Cp)

    # Global average pool: tile-aligned reshape + sublane reduce on the XLU
    # (replaces the old O(B^2*H*W) pool-matrix matmul).
    feats = jnp.sum(p.reshape(batch, hw, p.shape[-1]), axis=1) * (1.0 / hw)  # (B, Cp)

    # feature_extractor.fc
    h = jnp.dot(feats.astype(matmul_dtype), w1_ref[...].astype(matmul_dtype),
                preferred_element_type=jnp.float32) + b1

    # BatchNorm1d, training mode: biased batch variance, eps = 1e-5. Padded feature
    # columns stay exactly 0 because gamma/beta/w2 padding is exact zeros.
    mu = jnp.mean(h, axis=0, keepdims=True)
    var = jnp.mean((h - mu) ** 2, axis=0, keepdims=True)
    hn = (h - mu) * jax.lax.rsqrt(var + BN_EPS)
    a = jnp.maximum(hn * g + be, 0.0)                                 # ReLU

    # self.fc (no bias)
    o_ref[...] = jnp.dot(a.astype(matmul_dtype), w2_ref[...].astype(matmul_dtype),
                         preferred_element_type=jnp.float32)


# --------------------------- one-time parameter prep --------------------------

def prepare_params(params):
    """Pad / reshape / pack all weights ONCE (hoisted out of the per-call jit path)."""
    conv_w = params["conv_w"]                       # (3, 3, Cin, Cout)
    Cin, Cout = conv_w.shape[2], conv_w.shape[3]
    F = params["w1"].shape[-1]
    n_classes = params["w2"].shape[-1]
    K = 9 * Cin
    Kp, Cp, Fp, Np = _round_up(K), _round_up(Cout), _round_up(F), _round_up(n_classes)
    assert Cp == LANE and Fp == LANE, "vector packing assumes Cp == Fp == 128"

    wc = _pad2(conv_w.reshape(K, Cout).astype(jnp.float32), Kp, Cp)   # (Kp, Cp)
    w1 = _pad2(params["w1"].astype(jnp.float32), Cp, Fp)              # (Cp, Fp)
    w2 = _pad2(params["w2"].astype(jnp.float32), Fp, Np)              # (Fp, Np)

    # Pack the four (1, 128) vectors into one (8, 128) operand (one DMA instead of four).
    vec = jnp.zeros((8, LANE), jnp.float32)
    vec = vec.at[0].set(_pad_vec(params["conv_b"].astype(jnp.float32), LANE))
    vec = vec.at[1].set(_pad_vec(params["b1"].astype(jnp.float32), LANE))
    vec = vec.at[2].set(_pad_vec(params["gamma"].astype(jnp.float32), LANE))
    vec = vec.at[3].set(_pad_vec(params["beta"].astype(jnp.float32), LANE))

    pparams = {"wc": wc, "vec": vec, "w1": w1, "w2": w2}
    return pparams, n_classes


# ------------------------------- jitted forward --------------------------------

@functools.partial(jax.jit, static_argnames=("n_classes", "matmul_dtype"))
def icarl_forward(x_nchw, pparams, *, n_classes, matmul_dtype=jnp.float32):
    B, Cin, H, W = x_nchw.shape
    K = 9 * Cin
    Kp = _round_up(K)
    Np = pparams["w2"].shape[1]

    # im2col of x is the only per-call tensor prep (fused by XLA inside this jit).
    # NCHW -> NHWC, pad=1, kh-major / kw / cin-innermost patch layout.
    x = jnp.transpose(x_nchw, (0, 2, 3, 1)).astype(jnp.float32)       # (B, H, W, Cin)
    xpad = jnp.pad(x, ((0, 0), (1, 1), (1, 1), (0, 0)))
    cols = [xpad[:, kh:kh + H, kw:kw + W, :] for kh in range(3) for kw in range(3)]
    im2col = jnp.concatenate(cols, axis=-1).reshape(B * H * W, K)     # (B*H*W, 9*Cin)
    im2col = jnp.pad(im2col, ((0, 0), (0, Kp - K)))                   # lane-dense K
    # TODO(synk): at resnet32 scale, do im2col in-kernel (9 accumulating matmuls over
    #             the DMA'd padded NHWC tile) to avoid the K=27 -> 128 HBM inflation.

    kernel = functools.partial(icarl_fused_kernel, batch=B, hw=H * W,
                               matmul_dtype=matmul_dtype)
    vmem = pl.BlockSpec(memory_space=pltpu.MemorySpace.VMEM)
    logits_p = pl.pallas_call(
        kernel,
        out_shape=jax.ShapeDtypeStruct((B, Np), jnp.float32),
        in_specs=[vmem] * 5,
        out_specs=vmem,
        compiler_params=pltpu.CompilerParams(vmem_limit_bytes=32 * 1024 * 1024),
    )(im2col, pparams["wc"], pparams["vec"], pparams["w1"], pparams["w2"])
    return logits_p[:, :n_classes]


# ---------------------------- pure-JAX reference -----------------------------

def icarl_forward_ref(x_nchw, params):
    B, Cin, H, W = x_nchw.shape
    x = jnp.transpose(x_nchw, (0, 2, 3, 1)).astype(jnp.float32)
    xpad = jnp.pad(x, ((0, 0), (1, 1), (1, 1), (0, 0)))
    cols = [xpad[:, kh:kh + H, kw:kw + W, :] for kh in range(3) for kw in range(3)]
    im2col = jnp.concatenate(cols, axis=-1).reshape(B, H * W, 9 * Cin)
    wmat = params["conv_w"].reshape(9 * Cin, -1)
    p = jnp.maximum(im2col @ wmat + params["conv_b"], 0.0)
    feats = jnp.mean(p, axis=1)
    h = feats @ params["w1"] + params["b1"]
    mu = jnp.mean(h, axis=0, keepdims=True)
    var = jnp.mean((h - mu) ** 2, axis=0, keepdims=True)
    hn = (h - mu) / jnp.sqrt(var + BN_EPS) * params["gamma"] + params["beta"]
    return jnp.maximum(hn, 0.0) @ params["w2"]


# ----------------------------------- main ------------------------------------

if __name__ == "__main__":
    # Small shapes consistent with the module: CIFAR-like RGB input.
    B, Cin, H, W = 2, 3, 16, 16
    in_fc = 8            # stand-in for resnet32().get_in_fc()
    feature_size = 32
    n_classes = 10

    key = jax.random.PRNGKey(0)
    k = jax.random.split(key, 8)
    params = {
        # conv weight stored as (kh, kw, Cin, Cout) (PyTorch (Cout,Cin,kh,kw) permuted)
        "conv_w": 0.1 * jax.random.normal(k[0], (3, 3, Cin, in_fc), jnp.float32),
        "conv_b": 0.05 * jax.random.normal(k[1], (1, in_fc), jnp.float32),
        # Linear weights pre-transposed to (in, out); PyTorch stores (out, in).
        "w1": 0.1 * jax.random.normal(k[2], (in_fc, feature_size), jnp.float32),
        "b1": 0.05 * jax.random.normal(k[3], (1, feature_size), jnp.float32),
        "gamma": 1.0 + 0.1 * jax.random.normal(k[4], (1, feature_size), jnp.float32),
        "beta": 0.1 * jax.random.normal(k[5], (1, feature_size), jnp.float32),
        "w2": 0.1 * jax.random.normal(k[6], (feature_size, n_classes), jnp.float32),
    }
    x = jax.random.normal(k[7], (B, Cin, H, W), jnp.float32)

    # One-time prep (weight padding / packing) — hoisted out of the per-call path.
    pparams, nc = prepare_params(params)
    pparams = jax.block_until_ready(pparams)

    # First call compiles; second call is the steady-state jitted path.
    out = icarl_forward(x, pparams, n_classes=nc)
    out = jax.block_until_ready(out)
    out = jax.block_until_ready(icarl_forward(x, pparams, n_classes=nc))

    ref = icarl_forward_ref(x, params)
    np.testing.assert_allclose(np.asarray(out), np.asarray(ref), rtol=1e-4, atol=1e-4)
    assert out.shape == (B, n_classes)

    print("KERNEL_OK")
</pallas_src>

<mosaic_0001>
module attributes {stable_mosaic.version = 11 : i64} {
  func.func @icarl_fused_kernel(%arg0: memref<512x128xf32, #tpu.memory_space<vmem>>, %arg1: memref<128x128xf32, #tpu.memory_space<vmem>>, %arg2: memref<8x128xf32, #tpu.memory_space<vmem>>, %arg3: memref<128x128xf32, #tpu.memory_space<vmem>>, %arg4: memref<128x128xf32, #tpu.memory_space<vmem>>, %arg5: memref<2x128xf32, #tpu.memory_space<vmem>>) attributes {dimension_semantics = [], scalar_prefetch = 0 : i64, scratch_operands = 0 : i64, tpu.core_type = #tpu.core_type<tc>} {
    %c0 = arith.constant 0 : index
    %c0_0 = arith.constant 0 : index
    %0 = vector.load %arg2[%c0, %c0_0] : memref<8x128xf32, #tpu.memory_space<vmem>>, vector<1x128xf32>
    %c1 = arith.constant 1 : index
    %c0_1 = arith.constant 0 : index
    %1 = vector.load %arg2[%c1, %c0_1] : memref<8x128xf32, #tpu.memory_space<vmem>>, vector<1x128xf32>
    %c2 = arith.constant 2 : index
    %c0_2 = arith.constant 0 : index
    %2 = vector.load %arg2[%c2, %c0_2] : memref<8x128xf32, #tpu.memory_space<vmem>>, vector<1x128xf32>
    %c3 = arith.constant 3 : index
    %c0_3 = arith.constant 0 : index
    %3 = vector.load %arg2[%c3, %c0_3] : memref<8x128xf32, #tpu.memory_space<vmem>>, vector<1x128xf32>
    %c0_4 = arith.constant 0 : index
    %c0_5 = arith.constant 0 : index
    %4 = vector.load %arg0[%c0_4, %c0_5] : memref<512x128xf32, #tpu.memory_space<vmem>>, vector<512x128xf32>
    %c0_6 = arith.constant 0 : index
    %c0_7 = arith.constant 0 : index
    %5 = vector.load %arg1[%c0_6, %c0_7] : memref<128x128xf32, #tpu.memory_space<vmem>>, vector<128x128xf32>
    %cst = arith.constant dense<0.000000e+00> : vector<512x128xf32>
    %6 = tpu.matmul %4, %5, %cst {dimension_numbers = #tpu.dot_dimension_numbers<[1], [0], [0], [1], [0, 0, 1, 1], [], []>} : vector<512x128xf32>, vector<128x128xf32>, vector<512x128xf32> -> vector<512x128xf32>
    %7 = vector.broadcast %0 : vector<1x128xf32> to vector<512x128xf32>
    %8 = arith.addf %6, %7 : vector<512x128xf32>
    %cst_8 = arith.constant 0.000000e+00 : f32
    %9 = vector.broadcast %cst_8 : f32 to vector<512x128xf32>
    %10 = arith.maximumf %8, %9 : vector<512x128xf32>
    %11 = vector.shape_cast %10 : vector<512x128xf32> to vector<2x256x128xf32>
    %cst_9 = arith.constant dense<0.000000e+00> : vector<2x128xf32>
    %12 = vector.multi_reduction <add>, %11, %cst_9 [1] : vector<2x256x128xf32> to vector<2x128xf32>
    %cst_10 = arith.constant 3.906250e-03 : f32
    %13 = vector.broadcast %cst_10 : f32 to vector<2x128xf32>
    %14 = arith.mulf %12, %13 : vector<2x128xf32>
    %c0_11 = arith.constant 0 : index
    %c0_12 = arith.constant 0 : index
    %15 = vector.load %arg3[%c0_11, %c0_12] : memref<128x128xf32, #tpu.memory_space<vmem>>, vector<128x128xf32>
    %cst_13 = arith.constant dense<0.000000e+00> : vector<2x128xf32>
    %16 = tpu.matmul %14, %15, %cst_13 {dimension_numbers = #tpu.dot_dimension_numbers<[1], [0], [0], [1], [0, 0, 1, 1], [], []>} : vector<2x128xf32>, vector<128x128xf32>, vector<2x128xf32> -> vector<2x128xf32>
    %17 = vector.broadcast %1 : vector<1x128xf32> to vector<2x128xf32>
    %18 = arith.addf %16, %17 : vector<2x128xf32>
    %cst_14 = arith.constant dense<0.000000e+00> : vector<128xf32>
    %19 = vector.multi_reduction <add>, %18, %cst_14 [0] : vector<2x128xf32> to vector<128xf32>
    %20 = vector.shape_cast %19 : vector<128xf32> to vector<1x128xf32>
    %cst_15 = arith.constant 2.000000e+00 : f32
    %21 = vector.broadcast %cst_15 : f32 to vector<1x128xf32>
    %22 = arith.divf %20, %21 : vector<1x128xf32>
    %23 = vector.broadcast %22 : vector<1x128xf32> to vector<2x128xf32>
    %24 = arith.subf %18, %23 : vector<2x128xf32>
    %25 = arith.mulf %24, %24 : vector<2x128xf32>
    %cst_16 = arith.constant dense<0.000000e+00> : vector<128xf32>
    %26 = vector.multi_reduction <add>, %25, %cst_16 [0] : vector<2x128xf32> to vector<128xf32>
    %27 = vector.shape_cast %26 : vector<128xf32> to vector<1x128xf32>
    %cst_17 = arith.constant 2.000000e+00 : f32
    %28 = vector.broadcast %cst_17 : f32 to vector<1x128xf32>
    %29 = arith.divf %27, %28 : vector<1x128xf32>
    %30 = vector.broadcast %22 : vector<1x128xf32> to vector<2x128xf32>
    %31 = arith.subf %18, %30 : vector<2x128xf32>
    %cst_18 = arith.constant 9.99999974E-6 : f32
    %32 = vector.broadcast %cst_18 : f32 to vector<1x128xf32>
    %33 = arith.addf %29, %32 : vector<1x128xf32>
    %34 = math.rsqrt %33 : vector<1x128xf32>
    %35 = vector.broadcast %34 : vector<1x128xf32> to vector<2x128xf32>
    %36 = arith.mulf %31, %35 : vector<2x128xf32>
    %37 = vector.broadcast %2 : vector<1x128xf32> to vector<2x128xf32>
    %38 = arith.mulf %36, %37 : vector<2x128xf32>
    %39 = vector.broadcast %3 : vector<1x128xf32> to vector<2x128xf32>
    %40 = arith.addf %38, %39 : vector<2x128xf32>
    %cst_19 = arith.constant 0.000000e+00 : f32
    %41 = vector.broadcast %cst_19 : f32 to vector<2x128xf32>
    %42 = arith.maximumf %40, %41 : vector<2x128xf32>
    %c0_20 = arith.constant 0 : index
    %c0_21 = arith.constant 0 : index
    %43 = vector.load %arg4[%c0_20, %c0_21] : memref<128x128xf32, #tpu.memory_space<vmem>>, vector<128x128xf32>
    %cst_22 = arith.constant dense<0.000000e+00> : vector<2x128xf32>
    %44 = tpu.matmul %42, %43, %cst_22 {dimension_numbers = #tpu.dot_dimension_numbers<[1], [0], [0], [1], [0, 0, 1, 1], [], []>} : vector<2x128xf32>, vector<128x128xf32>, vector<2x128xf32> -> vector<2x128xf32>
    %c0_23 = arith.constant 0 : index
    %c0_24 = arith.constant 0 : index
    %45 = vector.load %arg5[%c0_23, %c0_24] : memref<2x128xf32, #tpu.memory_space<vmem>>, vector<2x128xf32>
    tpu.vector_store %arg5[%c0_23, %c0_24], %44 {strides = array<i32>} : memref<2x128xf32, #tpu.memory_space<vmem>>, vector<2x128xf32>,
    return
  }
}

</mosaic_0001>

<bundles_post_ra>
// kernel: icarl_forward.1
= control target key start
LH: loop header
LB: loop body
LE: loop exit
PB: predicated region body
PF: predicated region fallthrough
CT: control target
= control target key end

     0   :  { %s1856_s0 = inlined_call_operand.vmem [shape: f32[512,128], index: 0, kind: input, shape index: {}]   ;;  %s1857_s1 = inlined_call_operand.vmem [shape: f32[128,128], index: 1, kind: input, shape index: {}]   ;;  %s1858_s2 = inlined_call_operand.vmem [shape: f32[8,128], index: 2, kind: input, shape index: {}]   ;;  %s1859_s3 = inlined_call_operand.vmem [shape: f32[128,128], index: 3, kind: input, shape index: {}]   ;;  %s1860_s4 = inlined_call_operand.vmem [shape: f32[128,128], index: 4, kind: input, shape index: {}]   ;;  %s1861_s5 = inlined_call_operand.hbm [shape: f32[2,128], index: 5, kind: output, shape index: {}]  }
   0x1   :  { %v89_v0 = vld [vmem:[%s1857_s1] sm:$0xff]  ;;  %v90_v1 = vld [vmem:[%s1857_s1 + $0x8] sm:$0xff]  ;;  %v91_v2 = vld [vmem:[%s1857_s1 + $0x10] sm:$0xff] }
   0x2   :  { %v1180_v3 = vpack.c.bf16 %v90_v1, %v89_v0  ;;  %v92_v4 = vld [vmem:[%s1857_s1 + $0x18] sm:$0xff]  ;;  %v93_v6 = vld [vmem:[%s1857_s1 + $0x20] sm:$0xff]  ;;  %v94_v7 = vld [vmem:[%s1857_s1 + $0x28] sm:$0xff] }
   0x3   :  { %v1184_v5 = vpack.c.bf16 %v92_v4, %v91_v2  ;;  %v1188_v8 = vpack.c.bf16 %v94_v7, %v93_v6  ;;  %v25_v9 = vld [vmem:[%s1856_s0] sm:$0xff]  ;;  %v95_v10 = vld [vmem:[%s1857_s1 + $0x30] sm:$0xff]  ;;  %v96_v11 = vld [vmem:[%s1857_s1 + $0x38] sm:$0xff] }
   0x4   :  { %1181 = vmatprep.subr.bf16.mxu0 %v1180_v3  ;;  %1260 = vmatprep.subr.bf16.mxu1 %v1180_v3  ;;  %v1192_v12 = vpack.c.bf16 %v96_v11, %v95_v10  ;;  %v97_v13 = vld [vmem:[%s1857_s1 + $0x40] sm:$0xff]  ;;  %v98_v14 = vld [vmem:[%s1857_s1 + $0x48] sm:$0xff]  ;;  %v99_v16 = vld [vmem:[%s1857_s1 + $0x50] sm:$0xff] }
   0x5   :  { %1183 = vmatpush3.bf16.msra.mxu0 %v1180_v3  ;;  %1268 = vmatpush3.bf16.msra.mxu1 %v1180_v3  ;;  %v1196_v15 = vpack.c.bf16 %v98_v14, %v97_v13  ;;  %v100_v17 = vld [vmem:[%s1857_s1 + $0x58] sm:$0xff]  ;;  %v101_v19 = vld [vmem:[%s1857_s1 + $0x60] sm:$0xff]  ;;  %v102_v20 = vld [vmem:[%s1857_s1 + $0x68] sm:$0xff] }
   0x6   :  { %1185 = vmatprep.subr.bf16.mxu0 %v1184_v5  ;;  %1261 = vmatprep.subr.bf16.mxu1 %v1184_v5  ;;  %v1200_v18 = vpack.c.bf16 %v100_v17, %v99_v16  ;;  %v67_v21 = vld [vmem:[%s1856_s0 + $0x150] sm:$0xff]  ;;  %v1204_v22 = vpack.c.bf16 %v102_v20, %v101_v19  ;;  %v104_v24 = vld [vmem:[%s1857_s1 + $0x78] sm:$0xff] }
   0x7   :  { %1014 = vmatprep.mubr.f32.mxu0 %v25_v9  ;;  %v103_v23 = vld [vmem:[%s1857_s1 + $0x70] sm:$0xff]  ;;  %1077 = vmatprep.mubr.f32.mxu1 %v67_v21 }
   0x8   :  { %v1208_v25 = vpack.c.bf16 %v104_v24, %v103_v23 }
   0x9   :  { %1187 = vmatpush3.bf16.msra.mxu0 %v1184_v5  ;;  %1269 = vmatpush3.bf16.msra.mxu1 %v1184_v5 }
   0xa   :  { %1189 = vmatprep.subr.bf16.mxu0 %v1188_v8  ;;  %1262 = vmatprep.subr.bf16.mxu1 %v1188_v8 }
   0xd   :  { %1191 = vmatpush3.bf16.msra.mxu0 %v1188_v8  ;;  %1270 = vmatpush3.bf16.msra.mxu1 %v1188_v8 }
   0xe   :  { %1193 = vmatprep.subr.bf16.mxu0 %v1192_v12  ;;  %1263 = vmatprep.subr.bf16.mxu1 %v1192_v12 }
  0x11   :  { %1195 = vmatpush3.bf16.msra.mxu0 %v1192_v12  ;;  %1271 = vmatpush3.bf16.msra.mxu1 %v1192_v12 }
  0x12   :  { %1197 = vmatprep.subr.bf16.mxu0 %v1196_v15  ;;  %1264 = vmatprep.subr.bf16.mxu1 %v1196_v15 }
  0x15   :  { %1199 = vmatpush3.bf16.msra.mxu0 %v1196_v15  ;;  %1272 = vmatpush3.bf16.msra.mxu1 %v1196_v15 }
  0x16   :  { %1201 = vmatprep.subr.bf16.mxu0 %v1200_v18  ;;  %1265 = vmatprep.subr.bf16.mxu1 %v1200_v18 }
  0x19   :  { %1203 = vmatpush3.bf16.msra.mxu0 %v1200_v18  ;;  %1273 = vmatpush3.bf16.msra.mxu1 %v1200_v18 }
  0x1a   :  { %1205 = vmatprep.subr.bf16.mxu0 %v1204_v22  ;;  %1266 = vmatprep.subr.bf16.mxu1 %v1204_v22 }
  0x1b   :  { %10 = vsyncpa [#allocation3], 0  ;;  %v26_v26 = vld [vmem:[%s1856_s0 + $0x8] sm:$0xff]  ;;  %v68_v27 = vld [vmem:[%s1856_s0 + $0x158] sm:$0xff]  ;;  %vm1307_vm0 = vmmov 0   ;;  %vm656_vm1 = vcmask 1041409  }
  0x1c   :  { %v27_v28 = vld [vmem:[%s1856_s0 + $0x10] sm:$0xff]  ;;  %v69_v29 = vld [vmem:[%s1856_s0 + $0x160] sm:$0xff]  ;;  %v28_v30 = vld [vmem:[%s1856_s0 + $0x18] sm:$0xff]  ;;  %vm729_vm2 = vcmask 1041408   ;;  %s1309_s11 = smov [#allocation2]  }
  0x1d   :  { %1207 = vmatpush3.bf16.msra.mxu0 %v1204_v22  ;;  %1274 = vmatpush3.bf16.msra.mxu1 %v1204_v22  ;;  %v70_v31 = vld [vmem:[%s1856_s0 + $0x168] sm:$0xff]  ;;  %v29_v32 = vld [vmem:[%s1856_s0 + $0x20] sm:$0xff]  ;;  %v71_v33 = vld [vmem:[%s1856_s0 + $0x170] sm:$0xff]  ;;  %s856_s12 = sshll.u32 %s1309_s11, 4  ;;  %s857_s12 = int_to_ptr.vmem [resolvable:$true] %s856_s12 }
  0x1e   :  { %1209 = vmatprep.subr.bf16.mxu0 %v1208_v25  ;;  %1267 = vmatprep.subr.bf16.mxu1 %v1208_v25  ;;  %v30_v34 = vld [vmem:[%s1856_s0 + $0x28] sm:$0xff]  ;;  %v72_v35 = vld [vmem:[%s1856_s0 + $0x178] sm:$0xff]  ;;  %v31_v36 = vld [vmem:[%s1856_s0 + $0x30] sm:$0xff]  ;;  %s1282_s13 = scalar_lea.vmem %s857_s12, 32  ;;  %p1287_p1 = scmp.lt.s32.totalorder %s857_s12, %s857_s12 }
  0x1f   :  { %v73_v37 = vld [vmem:[%s1856_s0 + $0x180] sm:$0xff]  ;;  %v32_v38 = vld [vmem:[%s1856_s0 + $0x38] sm:$0xff]  ;;  %v74_v39 = vld [vmem:[%s1856_s0 + $0x188] sm:$0xff]  ;;  %p1283_p0 = scmp.ne.s32.totalorder %s857_s12, %s1282_s13  ;;  %p1288_p2 = scmp.lt.s32.totalorder %s1282_s13, %s1282_s13 }
  0x20   :  { %v33_v40 = vld [vmem:[%s1856_s0 + $0x40] sm:$0xff]  ;;  %v75_v41 = vld [vmem:[%s1856_s0 + $0x190] sm:$0xff]  ;;  %v34_v42 = vld [vmem:[%s1856_s0 + $0x48] sm:$0xff] }
  0x21   :  { %1211 = vmatpush3.bf16.msra.mxu0 %v1208_v25  ;;  %1275 = vmatpush3.bf16.msra.mxu1 %v1208_v25  ;;  %v76_v43 = vld [vmem:[%s1856_s0 + $0x198] sm:$0xff]  ;;  %v35_v44 = vld [vmem:[%s1856_s0 + $0x50] sm:$0xff]  ;;  %v77_v45 = vld [vmem:[%s1856_s0 + $0x1a0] sm:$0xff]  ;;  %p1289_p3 = por %p1288_p2, %p1287_p1 }
  0x22   :  { %v36_v46 = vld [vmem:[%s1856_s0 + $0x58] sm:$0xff]  ;;  %v78_v47 = vld [vmem:[%s1856_s0 + $0x1a8] sm:$0xff]  ;;  %v37_v48 = vld [vmem:[%s1856_s0 + $0x60] sm:$0xff] }
  0x23   :  { %v79_v49 = vld [vmem:[%s1856_s0 + $0x1b0] sm:$0xff]  ;;  %v38_v50 = vld [vmem:[%s1856_s0 + $0x68] sm:$0xff]  ;;  %v80_v51 = vld [vmem:[%s1856_s0 + $0x1b8] sm:$0xff]  ;;  %p1290_p4 = pnand %p1289_p3, %p1283_p0 }
  0x24   :  { %1015 = vmatmul.mubr.f32.vlgmr.msra.gmra.mrb[0].mxu0 %v26_v26  ;;  %1078 = vmatmul.mubr.f32.vlgmr.msra.gmra.mrb[0].mxu1 %v68_v27  ;;  %v39_v52 = vld [vmem:[%s1856_s0 + $0x70] sm:$0xff]  ;;  %v81_v53 = vld [vmem:[%s1856_s0 + $0x1c0] sm:$0xff]  ;;  %v40_v54 = vld [vmem:[%s1856_s0 + $0x78] sm:$0xff]  ;;  %v1306_v26 = vmov 0.0|0.0  }
  0x25   :  { %1017 = vmatprep.mubr.f32.mxu0 %v27_v28  ;;  %1080 = vmatprep.mubr.f32.mxu1 %v69_v29  ;;  %v82_v55 = vld [vmem:[%s1856_s0 + $0x1c8] sm:$0xff]  ;;  %v41_v56 = vld [vmem:[%s1856_s0 + $0x80] sm:$0xff]  ;;  %v83_v57 = vld [vmem:[%s1856_s0 + $0x1d0] sm:$0xff] }
  0x26   :  { %v42_v58 = vld [vmem:[%s1856_s0 + $0x88] sm:$0xff]  ;;  %v84_v59 = vld [vmem:[%s1856_s0 + $0x1d8] sm:$0xff]  ;;  %v43_v60 = vld [vmem:[%s1856_s0 + $0x90] sm:$0xff]  ;;  %1212 = vmatprep.subr.bf16.mxu1 %v1306_v26 }
  0x27   :  { %v85_v61 = vld [vmem:[%s1856_s0 + $0x1e0] sm:$0xff]  ;;  %v44_v62 = vld [vmem:[%s1856_s0 + $0x98] sm:$0xff]  ;;  %v86_v63 = vld [vmem:[%s1856_s0 + $0x1e8] sm:$0xff] }
  0x28   :  { %1018 = vmatmul.mubr.f32.gmra.mrb[2].mxu0 %v28_v30  ;;  %1081 = vmatmul.mubr.f32.gmra.mrb[2].mxu1 %v70_v31  ;;  %v45_v0 = vld [vmem:[%s1856_s0 + $0xa0] sm:$0xff]  ;;  %v87_v1 = vld [vmem:[%s1856_s0 + $0x1f0] sm:$0xff]  ;;  %v46_v2 = vld [vmem:[%s1856_s0 + $0xa8] sm:$0xff] }
  0x29   :  { %1020 = vmatprep.mubr.f32.mxu0 %v29_v32  ;;  %1083 = vmatprep.mubr.f32.mxu1 %v71_v33  ;;  %v88_v3 = vld [vmem:[%s1856_s0 + $0x1f8] sm:$0xff]  ;;  %v47_v4 = vld [vmem:[%s1856_s0 + $0xb0] sm:$0xff]  ;;  %v49_v6 = vld [vmem:[%s1856_s0 + $0xc0] sm:$0xff] }
  0x2a   :  { %v48_v5 = vld [vmem:[%s1856_s0 + $0xb8] sm:$0xff]  ;;  %v50_v7 = vld [vmem:[%s1856_s0 + $0xc8] sm:$0xff]  ;;  %v51_v8 = vld [vmem:[%s1856_s0 + $0xd0] sm:$0xff] }
  0x2b   :  { %v52_v9 = vld [vmem:[%s1856_s0 + $0xd8] sm:$0xff]  ;;  %v53_v10 = vld [vmem:[%s1856_s0 + $0xe0] sm:$0xff]  ;;  %v54_v11 = vld [vmem:[%s1856_s0 + $0xe8] sm:$0xff] }
  0x2c   :  { %1021 = vmatmul.mubr.f32.gmra.mrb[4].mxu0 %v30_v34  ;;  %1084 = vmatmul.mubr.f32.gmra.mrb[4].mxu1 %v72_v35  ;;  %v55_v12 = vld [vmem:[%s1856_s0 + $0xf0] sm:$0xff]  ;;  %v56_v13 = vld [vmem:[%s1856_s0 + $0xf8] sm:$0xff]  ;;  %v57_v14 = vld [vmem:[%s1856_s0 + $0x100] sm:$0xff] }
  0x2d   :  { %1023 = vmatprep.mubr.f32.mxu0 %v31_v36  ;;  %1086 = vmatprep.mubr.f32.mxu1 %v73_v37  ;;  %v58_v15 = vld [vmem:[%s1856_s0 + $0x108] sm:$0xff]  ;;  %v59_v16 = vld [vmem:[%s1856_s0 + $0x110] sm:$0xff]  ;;  %v60_v17 = vld [vmem:[%s1856_s0 + $0x118] sm:$0xff] }
  0x2e   :  { %v61_v18 = vld [vmem:[%s1856_s0 + $0x120] sm:$0xff]  ;;  %v62_v19 = vld [vmem:[%s1856_s0 + $0x128] sm:$0xff]  ;;  %v63_v20 = vld [vmem:[%s1856_s0 + $0x130] sm:$0xff] }
  0x2f   :  { %v64_v21 = vld [vmem:[%s1856_s0 + $0x138] sm:$0xff]  ;;  %v65_v22 = vld [vmem:[%s1856_s0 + $0x140] sm:$0xff]  ;;  %v66_v23 = vld [vmem:[%s1856_s0 + $0x148] sm:$0xff] }
  0x30   :  { %1024 = vmatmul.mubr.f32.gmra.mrb[6].mxu0 %v32_v38  ;;  %1087 = vmatmul.mubr.f32.gmra.mrb[6].mxu1 %v74_v39  ;;  %v634_v24 = vld [vmem:[%s1859_s3] sm:$0xff]  ;;  %v635_v25 = vld [vmem:[%s1859_s3 + $0x8] sm:$0xff]  ;;  %v636_v28 = vld [vmem:[%s1859_s3 + $0x10] sm:$0xff] }
  0x31   :  { %1026 = vmatprep.mubr.f32.mxu0 %v33_v40  ;;  %1089 = vmatprep.mubr.f32.mxu1 %v75_v41  ;;  %v1213_v27 = vpack.c.bf16 %v635_v25, %v634_v24  ;;  %v637_v29 = vld [vmem:[%s1859_s3 + $0x18] sm:$0xff]  ;;  %v638_v31 = vld [vmem:[%s1859_s3 + $0x20] sm:$0xff]  ;;  %v639_v32 = vld [vmem:[%s1859_s3 + $0x28] sm:$0xff]  ;;  %v1308_v24 = vmov 0.0  }
  0x32   :  { %v1216_v30 = vpack.c.bf16 %v637_v29, %v636_v28  ;;  %v1219_v33 = vpack.c.bf16 %v639_v32, %v638_v31  ;;  %v1604_v34 = vld [vmem:[%s1858_s2] ss:$0 sm:$0xff]  ;;  %v640_v35 = vld [vmem:[%s1859_s3 + $0x30] sm:$0xff]  ;;  %v641_v36 = vld [vmem:[%s1859_s3 + $0x38] sm:$0xff] }
  0x33   :  { %1214 = vmatpush3.bf16.msra.mxu1 %v1213_v27  ;;  %v1222_v37 = vpack.c.bf16 %v641_v36, %v640_v35 }
  0x34   :  { %1027 = vmatmul.mubr.f32.gmra.mrb[8].mxu0 %v34_v42  ;;  %1090 = vmatmul.mubr.f32.gmra.mrb[8].mxu1 %v76_v43 }
  0x35   :  { %1029 = vmatprep.mubr.f32.mxu0 %v35_v44  ;;  %1092 = vmatprep.mubr.f32.mxu1 %v77_v45  ;;  %v642_v45 = vld [vmem:[%s1859_s3 + $0x40] sm:$0xff] }
  0x36   :  { %1215 = vmatprep.subr.bf16.mxu1 %v1306_v26 }
  0x37   :  { %1217 = vmatpush3.bf16.msra.mxu1 %v1216_v30 }
  0x38   :  { %1030 = vmatmul.mubr.f32.gmra.mrb[10].mxu0 %v36_v46  ;;  %1093 = vmatmul.mubr.f32.gmra.mrb[10].mxu1 %v78_v47  ;;  %v643_v46 = vld [vmem:[%s1859_s3 + $0x48] sm:$0xff] }
  0x39   :  { %1032 = vmatprep.mubr.f32.mxu0 %v37_v48  ;;  %1095 = vmatprep.mubr.f32.mxu1 %v79_v49 }
  0x3a   :  { %1218 = vmatprep.subr.bf16.mxu1 %v1306_v26 }
  0x3b   :  { %1220 = vmatpush3.bf16.msra.mxu1 %v1219_v33 }
  0x3c   :  { %1033 = vmatmul.mubr.f32.gmra.mrb[12].mxu0 %v38_v50  ;;  %1096 = vmatmul.mubr.f32.gmra.mrb[12].mxu1 %v80_v51  ;;  %v1225_v50 = vpack.c.bf16 %v643_v46, %v642_v45 }
  0x3d   :  { %1035 = vmatprep.mubr.f32.mxu0 %v39_v52  ;;  %1098 = vmatprep.mubr.f32.mxu1 %v81_v53 }
  0x3e   :  { %1221 = vmatprep.subr.bf16.mxu1 %v1306_v26 }
  0x3f   :  { %1223 = vmatpush3.bf16.msra.mxu1 %v1222_v37 }
  0x40   :  { %1036 = vmatmul.mubr.f32.gmra.mrb[14].mxu0 %v40_v54  ;;  %1099 = vmatmul.mubr.f32.gmra.mrb[14].mxu1 %v82_v55 }
  0x41   :  { %1038 = vmatprep.mubr.f32.mxu0 %v41_v56  ;;  %1101 = vmatprep.mubr.f32.mxu1 %v83_v57  ;;  %v644_v56 = vld [vmem:[%s1859_s3 + $0x50] sm:$0xff]  ;;  %v645_v57 = vld [vmem:[%s1859_s3 + $0x58] sm:$0xff] }
  0x42   :  { %1224 = vmatprep.subr.bf16.mxu1 %v1306_v26 }
  0x43   :  { %1226 = vmatpush3.bf16.msra.mxu1 %v1225_v50 }
  0x44   :  { %1039 = vmatmul.mubr.f32.gmra.mrb[16].mxu0 %v42_v58  ;;  %1102 = vmatmul.mubr.f32.gmra.mrb[16].mxu1 %v84_v59 }
  0x45   :  { %1041 = vmatprep.mubr.f32.mxu0 %v43_v60  ;;  %1104 = vmatprep.mubr.f32.mxu1 %v85_v61  ;;  %v1228_v61 = vpack.c.bf16 %v645_v57, %v644_v56 }
  0x46   :  { %1227 = vmatprep.subr.bf16.mxu1 %v1306_v26 }
  0x47   :  { %1229 = vmatpush3.bf16.msra.mxu1 %v1228_v61 }
  0x48   :  { %1042 = vmatmul.mubr.f32.gmra.mrb[18].mxu0 %v44_v62  ;;  %1105 = vmatmul.mubr.f32.gmra.mrb[18].mxu1 %v86_v63 }
  0x49   :  { %1044 = vmatprep.mubr.f32.mxu0 %v45_v0  ;;  %1107 = vmatprep.mubr.f32.mxu1 %v87_v1 }
  0x4a   :  { %1230 = vmatprep.subr.bf16.mxu1 %v1306_v26 }
  0x4c   :  { %1045 = vmatmul.mubr.f32.gmra.mrb[20].mxu0 %v46_v2  ;;  %1108 = vmatmul.mubr.f32.gmra.mrb[20].mxu1 %v88_v3 }
  0x4d   :  { %1047 = vmatprep.mubr.f32.mxu0 %v47_v4  ;;  %v646_v4 = vld [vmem:[%s1859_s3 + $0x60] sm:$0xff]  ;;  %1142 = vmatprep.mubr.msk.f32.mxu1 %vm1307_vm0, %v1308_v24 }
  0x50   :  { %1048 = vmatmul.mubr.f32.gmra.mrb[22].mxu0 %v48_v5  ;;  %v647_v5 = vld [vmem:[%s1859_s3 + $0x68] sm:$0xff] }
  0x51   :  { %1050 = vmatprep.mubr.f32.mxu0 %v49_v6 }
  0x54   :  { %1051 = vmatmul.mubr.f32.gmra.mrb[24].mxu0 %v50_v7 }
  0x55   :  { %1053 = vmatprep.mubr.f32.mxu0 %v51_v8 }
  0x58   :  { %1054 = vmatmul.mubr.f32.gmra.mrb[26].mxu0 %v52_v9 }
  0x59   :  { %1056 = vmatprep.mubr.f32.mxu0 %v53_v10  ;;  %v1231_v10 = vpack.c.bf16 %v647_v5, %v646_v4 }
  0x5b   :  { %1232 = vmatpush3.bf16.msra.mxu1 %v1231_v10 }
  0x5c   :  { %1057 = vmatmul.mubr.f32.gmra.mrb[28].mxu0 %v54_v11  ;;  %1233 = vmatprep.subr.bf16.mxu1 %v1306_v26 }
  0x5d   :  { %1059 = vmatprep.mubr.f32.mxu0 %v55_v12 }
  0x60   :  { %1060 = vmatmul.mubr.f32.gmra.mrb[30].mxu0 %v56_v13 }
  0x61   :  { %1062 = vmatprep.mubr.f32.mxu0 %v57_v14 }
  0x64   :  { %1063 = vmatmul.mubr.f32.gmra.mrb[32].mxu0 %v58_v15 }
  0x65   :  { %1065 = vmatprep.mubr.f32.mxu0 %v59_v16 }
  0x68   :  { %1066 = vmatmul.mubr.f32.gmra.mrb[34].mxu0 %v60_v17  ;;  %v648_v17 = vld [vmem:[%s1859_s3 + $0x70] sm:$0xff] }
  0x69   :  { %1068 = vmatprep.mubr.f32.mxu0 %v61_v18  ;;  %v649_v18 = vld [vmem:[%s1859_s3 + $0x78] sm:$0xff] }
  0x6c   :  { %1069 = vmatmul.mubr.f32.gmra.mrb[36].mxu0 %v62_v19  ;;  %v1234_v19 = vpack.c.bf16 %v649_v18, %v648_v17 }
  0x6d   :  { %1071 = vmatprep.mubr.f32.mxu0 %v63_v20 }
  0x6e   :  { %1235 = vmatpush3.bf16.msra.mxu1 %v1234_v19 }
  0x6f   :  { %1236 = vmatprep.subr.bf16.mxu1 %v1306_v26 }
  0x70   :  { %1072 = vmatmul.mubr.f32.gmra.mrb[38].mxu0 %v64_v21 }
  0x71   :  { %1074 = vmatprep.mubr.f32.mxu0 %v65_v22 }
  0x74   :  { %1075 = vmatmul.mubr.f32.gmra.mrb[40].mxu0 %v66_v23 }
  0xf7   :  { %v1016_v38 = vpop.f32.mrb[0].mxu0  ;;  %v1613_v39 = vpop.f32.mrb[0].mxu1 }
  0xf8   :  { %v181_v40 = vadd.f32 %v1016_v38, %v1604_v34  ;;  %v175_v41 = vpop.f32.mrb[1].mxu0  ;;  %v1616_v42 = vpop.f32.mrb[1].mxu1 }
  0xf9   :  { %v176_v43 = vadd.f32 %v1604_v34, %v175_v41 }
  0xfa   :  { %v495_v44 = vmax.f32 %v181_v40, 0.0 }
  0xfb   :  { %v494_v47 = vmax.f32 %v176_v43, 0.0  ;;  %v1019_v48 = vpop.f32.mrb[2].mxu0  ;;  %v1626_v49 = vpop.f32.mrb[2].mxu1 }
  0xfc   :  { %v185_v51 = vpop.f32.mrb[3].mxu0  ;;  %v1628_v52 = vpop.f32.mrb[3].mxu1  ;;  %v191_v54 = vadd.f32 %v1019_v48, %v1604_v34 }
  0xfd   :  { %v558_v53 = vadd.f32 %v495_v44, %v494_v47  ;;  %v186_v55 = vadd.f32 %v1604_v34, %v185_v51 }
  0xfe   :  { %v497_v1 = vmax.f32 %v191_v54, 0.0 }
  0xff   :  { %v496_v58 = vmax.f32 %v186_v55, 0.0  ;;  %v1022_v59 = vpop.f32.mrb[4].mxu0  ;;  %v1639_v60 = vpop.f32.mrb[4].mxu1 }
 0x100   :  { %v201_v62 = vadd.f32 %v1022_v59, %v1604_v34  ;;  %v195_v63 = vpop.f32.mrb[5].mxu0  ;;  %v1642_v0 = vpop.f32.mrb[5].mxu1 }
 0x101   :  { %v559_v2 = vadd.f32 %v558_v53, %v496_v58  ;;  %v196_v3 = vadd.f32 %v1604_v34, %v195_v63 }
 0x102   :  { %v499_v11 = vmax.f32 %v201_v62, 0.0 }
 0x103   :  { %v498_v6 = vmax.f32 %v196_v3, 0.0  ;;  %v560_v7 = vadd.f32 %v559_v2, %v497_v1  ;;  %v1025_v8 = vpop.f32.mrb[6].mxu0  ;;  %v1652_v9 = vpop.f32.mrb[6].mxu1 }
 0x104   :  { %v205_v12 = vpop.f32.mrb[7].mxu0  ;;  %v1654_v13 = vpop.f32.mrb[7].mxu1  ;;  %v211_v15 = vadd.f32 %v1025_v8, %v1604_v34 }
 0x105   :  { %v561_v14 = vadd.f32 %v560_v7, %v498_v6  ;;  %v206_v16 = vadd.f32 %v1604_v34, %v205_v12 }
 0x106   :  { %v501_v28 = vmax.f32 %v211_v15, 0.0 }
 0x107   :  { %v500_v20 = vmax.f32 %v206_v16, 0.0  ;;  %v562_v21 = vadd.f32 %v561_v14, %v499_v11  ;;  %v1028_v22 = vpop.f32.mrb[8].mxu0  ;;  %v1665_v23 = vpop.f32.mrb[8].mxu1 }
 0x108   :  { %v215_v25 = vpop.f32.mrb[9].mxu0  ;;  %v1669_v27 = vpop.f32.mrb[9].mxu1  ;;  %v221_v30 = vadd.f32 %v1028_v22, %v1604_v34 }
 0x109   :  { %v563_v29 = vadd.f32 %v562_v21, %v500_v20  ;;  %v216_v31 = vadd.f32 %v1604_v34, %v215_v25 }
 0x10a   :  { %v503_v40 = vmax.f32 %v221_v30, 0.0 }
 0x10b   :  { %v502_v32 = vmax.f32 %v216_v31, 0.0  ;;  %v564_v33 = vadd.f32 %v563_v29, %v501_v28  ;;  %v1031_v35 = vpop.f32.mrb[10].mxu0  ;;  %v1674_v36 = vpop.f32.mrb[10].mxu1 }
 0x10c   :  { %v225_v37 = vpop.f32.mrb[11].mxu0  ;;  %v1676_v38 = vpop.f32.mrb[11].mxu1  ;;  %v231_v43 = vadd.f32 %v1031_v35, %v1604_v34 }
 0x10d   :  { %v565_v41 = vadd.f32 %v564_v33, %v502_v32  ;;  %v226_v44 = vadd.f32 %v1604_v34, %v225_v37 }
 0x10e   :  { %v505_v53 = vmax.f32 %v231_v43, 0.0 }
 0x10f   :  { %v504_v45 = vmax.f32 %v226_v44, 0.0  ;;  %v566_v46 = vadd.f32 %v565_v41, %v503_v40  ;;  %v1034_v47 = vpop.f32.mrb[12].mxu0  ;;  %v1680_v48 = vpop.f32.mrb[12].mxu1 }
 0x110   :  { %v235_v50 = vpop.f32.mrb[13].mxu0  ;;  %v1682_v51 = vpop.f32.mrb[13].mxu1  ;;  %v241_v55 = vadd.f32 %v1034_v47, %v1604_v34 }
 0x111   :  { %v567_v54 = vadd.f32 %v566_v46, %v504_v45  ;;  %v236_v56 = vadd.f32 %v1604_v34, %v235_v50 }
 0x112   :  { %v507_v1 = vmax.f32 %v241_v55, 0.0 }
 0x113   :  { %v506_v57 = vmax.f32 %v236_v56, 0.0  ;;  %v568_v58 = vadd.f32 %v567_v54, %v505_v53  ;;  %v1037_v59 = vpop.f32.mrb[14].mxu0  ;;  %v1686_v61 = vpop.f32.mrb[14].mxu1 }
 0x114   :  { %v245_v62 = vpop.f32.mrb[15].mxu0  ;;  %v1688_v63 = vpop.f32.mrb[15].mxu1  ;;  %v251_v3 = vadd.f32 %v1037_v59, %v1604_v34 }
 0x115   :  { %v569_v2 = vadd.f32 %v568_v58, %v506_v57  ;;  %v246_v4 = vadd.f32 %v1604_v34, %v245_v62 }
 0x116   :  { %v509_v12 = vmax.f32 %v251_v3, 0.0 }
 0x117   :  { %v508_v5 = vmax.f32 %v246_v4, 0.0  ;;  %v570_v6 = vadd.f32 %v569_v2, %v507_v1  ;;  %v1040_v7 = vpop.f32.mrb[16].mxu0  ;;  %v1692_v8 = vpop.f32.mrb[16].mxu1 }
 0x118   :  { %v255_v10 = vpop.f32.mrb[17].mxu0  ;;  %v1694_v11 = vpop.f32.mrb[17].mxu1  ;;  %v261_v15 = vadd.f32 %v1040_v7, %v1604_v34 }
 0x119   :  { %v571_v14 = vadd.f32 %v570_v6, %v508_v5  ;;  %v256_v16 = vadd.f32 %v1604_v34, %v255_v10 }
 0x11a   :  { %v511_v25 = vmax.f32 %v261_v15, 0.0 }
 0x11b   :  { %v510_v17 = vmax.f32 %v256_v16, 0.0  ;;  %v572_v18 = vadd.f32 %v571_v14, %v509_v12  ;;  %v1043_v19 = vpop.f32.mrb[18].mxu0  ;;  %v1698_v20 = vpop.f32.mrb[18].mxu1 }
 0x11c   :  { %v265_v21 = vpop.f32.mrb[19].mxu0  ;;  %v1700_v22 = vpop.f32.mrb[19].mxu1  ;;  %v271_v29 = vadd.f32 %v1043_v19, %v1604_v34 }
 0x11d   :  { %v573_v28 = vadd.f32 %v572_v18, %v510_v17  ;;  %v266_v30 = vadd.f32 %v1604_v34, %v265_v21 }
 0x11e   :  { %v513_v41 = vmax.f32 %v271_v29, 0.0 }
 0x11f   :  { %v512_v31 = vmax.f32 %v266_v30, 0.0  ;;  %v574_v32 = vadd.f32 %v573_v28, %v511_v25  ;;  %v1046_v33 = vpop.f32.mrb[20].mxu0  ;;  %v1704_v35 = vpop.f32.mrb[20].mxu1 }
 0x120   :  { %v275_v37 = vpop.f32.mrb[21].mxu0  ;;  %v1706_v40 = vpop.f32.mrb[21].mxu1  ;;  %v281_v44 = vadd.f32 %v1046_v33, %v1604_v34 }
 0x121   :  { %v575_v43 = vadd.f32 %v574_v32, %v512_v31  ;;  %v276_v45 = vadd.f32 %v1604_v34, %v275_v37 }
 0x122   :  { %v515_v54 = vmax.f32 %v281_v44, 0.0 }
 0x123   :  { %v514_v46 = vmax.f32 %v276_v45, 0.0  ;;  %v576_v47 = vadd.f32 %v575_v43, %v513_v41  ;;  %v1049_v50 = vpop.f32.mrb[22].mxu0 }
 0x124   :  { %v285_v53 = vpop.f32.mrb[23].mxu0  ;;  %v291_v56 = vadd.f32 %v1049_v50, %v1604_v34 }
 0x125   :  { %v577_v55 = vadd.f32 %v576_v47, %v514_v46  ;;  %v286_v57 = vadd.f32 %v1604_v34, %v285_v53 }
 0x126   :  { %v517_v2 = vmax.f32 %v291_v56, 0.0 }
 0x127   :  { %v516_v58 = vmax.f32 %v286_v57, 0.0  ;;  %v578_v59 = vadd.f32 %v577_v55, %v515_v54  ;;  %v1052_v62 = vpop.f32.mrb[24].mxu0 }
 0x128   :  { %v295_v1 = vpop.f32.mrb[25].mxu0  ;;  %v301_v4 = vadd.f32 %v1052_v62, %v1604_v34 }
 0x129   :  { %v579_v3 = vadd.f32 %v578_v59, %v516_v58  ;;  %v296_v5 = vadd.f32 %v1604_v34, %v295_v1 }
 0x12a   :  { %v519_v14 = vmax.f32 %v301_v4, 0.0 }
 0x12b   :  { %v518_v6 = vmax.f32 %v296_v5, 0.0  ;;  %v580_v7 = vadd.f32 %v579_v3, %v517_v2  ;;  %v1055_v10 = vpop.f32.mrb[26].mxu0 }
 0x12c   :  { %v305_v12 = vpop.f32.mrb[27].mxu0  ;;  %v311_v16 = vadd.f32 %v1055_v10, %v1604_v34 }
 0x12d   :  { %v581_v15 = vadd.f32 %v580_v7, %v518_v6  ;;  %v306_v17 = vadd.f32 %v1604_v34, %v305_v12 }
 0x12e   :  { %v521_v28 = vmax.f32 %v311_v16, 0.0 }
 0x12f   :  { %v520_v18 = vmax.f32 %v306_v17, 0.0  ;;  %v582_v19 = vadd.f32 %v581_v15, %v519_v14  ;;  %v1058_v21 = vpop.f32.mrb[28].mxu0 }
 0x130   :  { %v315_v25 = vpop.f32.mrb[29].mxu0  ;;  %v321_v30 = vadd.f32 %v1058_v21, %v1604_v34 }
 0x131   :  { %v583_v29 = vadd.f32 %v582_v19, %v520_v18  ;;  %v316_v31 = vadd.f32 %v1604_v34, %v315_v25 }
 0x132   :  { %v523_v43 = vmax.f32 %v321_v30, 0.0 }
 0x133   :  { %v522_v32 = vmax.f32 %v316_v31, 0.0  ;;  %v584_v33 = vadd.f32 %v583_v29, %v521_v28  ;;  %v1061_v37 = vpop.f32.mrb[30].mxu0 }
 0x134   :  { %v325_v41 = vpop.f32.mrb[31].mxu0  ;;  %v331_v45 = vadd.f32 %v1061_v37, %v1604_v34 }
 0x135   :  { %v585_v44 = vadd.f32 %v584_v33, %v522_v32  ;;  %v326_v46 = vadd.f32 %v1604_v34, %v325_v41 }
 0x136   :  { %v525_v56 = vmax.f32 %v331_v45, 0.0 }
 0x137   :  { %v524_v47 = vmax.f32 %v326_v46, 0.0  ;;  %v586_v50 = vadd.f32 %v585_v44, %v523_v43  ;;  %v1064_v53 = vpop.f32.mrb[32].mxu0  ;;  %v386_v43 = vadd.f32 %v1604_v34, %v1616_v42 }
 0x138   :  { %v341_v54 = vadd.f32 %v1064_v53, %v1604_v34  ;;  %v335_v55 = vpop.f32.mrb[33].mxu0 }
 0x139   :  { %v587_v57 = vadd.f32 %v586_v50, %v524_v47  ;;  %v336_v58 = vadd.f32 %v1604_v34, %v335_v55 }
 0x13a   :  { %v527_v59 = vmax.f32 %v341_v54, 0.0  ;;  %v391_v54 = vadd.f32 %v1613_v39, %v1604_v34  ;;  %v411_v39 = vadd.f32 %v1639_v60, %v1604_v34  ;;  %v431_v60 = vadd.f32 %v1665_v23, %v1604_v34 }
 0x13b   :  { %v1722_v62 = vadd.f32 %v587_v57, %v525_v56  ;;  %v526_v1 = vmax.f32 %v336_v58, 0.0  ;;  %v1067_v2 = vpop.f32.mrb[34].mxu0  ;;  %v536_v57 = vmax.f32 %v386_v43, 0.0  ;;  %v396_v58 = vadd.f32 %v1604_v34, %v1628_v52 }
 0x13c   :  { %v345_v3 = vpop.f32.mrb[35].mxu0  ;;  %v351_v5 = vadd.f32 %v1067_v2, %v1604_v34  ;;  %v401_v2 = vadd.f32 %v1626_v49, %v1604_v34  ;;  %v416_v52 = vadd.f32 %v1604_v34, %v1654_v13  ;;  %v421_v49 = vadd.f32 %v1652_v9, %v1604_v34 }
 0x13d   :  { %v595_v4 = vadd.f32 %v527_v59, %v526_v1  ;;  %v346_v6 = vadd.f32 %v1604_v34, %v345_v3  ;;  %v537_v1 = vmax.f32 %v391_v54, 0.0  ;;  %v538_v3 = vmax.f32 %v396_v58, 0.0 }
 0x13e   :  { %v529_v14 = vmax.f32 %v351_v5, 0.0  ;;  %v436_v13 = vadd.f32 %v1604_v34, %v1676_v38  ;;  %v441_v9 = vadd.f32 %v1674_v36, %v1604_v34  ;;  %v451_v23 = vadd.f32 %v1680_v48, %v1604_v34 }
 0x13f   :  { %v528_v7 = vmax.f32 %v346_v6, 0.0  ;;  %v1070_v10 = vpop.f32.mrb[36].mxu0  ;;  %v539_v6 = vmax.f32 %v401_v2, 0.0  ;;  %v456_v38 = vadd.f32 %v1604_v34, %v1688_v63  ;;  %v461_v36 = vadd.f32 %v1686_v61, %v1604_v34 }
 0x140   :  { %v355_v12 = vpop.f32.mrb[37].mxu0  ;;  %v361_v16 = vadd.f32 %v1070_v10, %v1604_v34  ;;  %v549_v43 = vmax.f32 %v451_v23, 0.0  ;;  %v471_v48 = vadd.f32 %v1692_v8, %v1604_v34  ;;  %v476_v63 = vadd.f32 %v1604_v34, %v1700_v22  ;;  %v774_v23 = vld [vmem:[%s1860_s4 + $0x58] sm:$0xff] }
 0x141   :  { %v596_v15 = vadd.f32 %v595_v4, %v528_v7  ;;  %v356_v17 = vadd.f32 %v1604_v34, %v355_v12  ;;  %v406_v4 = vadd.f32 %v1604_v34, %v1642_v0  ;;  %v426_v0 = vadd.f32 %v1604_v34, %v1669_v27 }
 0x142   :  { %v531_v28 = vmax.f32 %v361_v16, 0.0  ;;  %v542_v16 = vmax.f32 %v416_v52, 0.0  ;;  %v446_v27 = vadd.f32 %v1604_v34, %v1682_v51  ;;  %v466_v51 = vadd.f32 %v1604_v34, %v1694_v11 }
 0x143   :  { %v530_v18 = vmax.f32 %v356_v17, 0.0  ;;  %v597_v19 = vadd.f32 %v596_v15, %v529_v14  ;;  %v1073_v21 = vpop.f32.mrb[38].mxu0  ;;  %v540_v10 = vmax.f32 %v406_v4, 0.0  ;;  %v541_v14 = vmax.f32 %v411_v39, 0.0 }
 0x144   :  { %v365_v25 = vpop.f32.mrb[39].mxu0  ;;  %v371_v30 = vadd.f32 %v1073_v21, %v1604_v34  ;;  %v544_v21 = vmax.f32 %v426_v0, 0.0  ;;  %v589_v61 = vrot.slane %v1722_v62, 4  ;;  %v554_v58 = vmax.f32 %v476_v63, 0.0 }
 0x145   :  { %v598_v29 = vadd.f32 %v597_v19, %v530_v18  ;;  %v366_v31 = vadd.f32 %v1604_v34, %v365_v25  ;;  %v543_v18 = vmax.f32 %v421_v49, 0.0  ;;  %v486_v11 = vadd.f32 %v1604_v34, %v1706_v40 }
 0x146   :  { %v533_v44 = vmax.f32 %v371_v30, 0.0  ;;  %v546_v30 = vmax.f32 %v436_v13, 0.0  ;;  %v491_v22 = vadd.f32 %v1704_v35, %v1604_v34  ;;  %v764_v35 = vld [vmem:[%s1860_s4 + $0x8] sm:$0xff] }
 0x147   :  { %v532_v32 = vmax.f32 %v366_v31, 0.0  ;;  %v599_v33 = vadd.f32 %v598_v29, %v531_v28  ;;  %v1076_v37 = vpop.f32.mrb[40].mxu0  ;;  %v545_v28 = vmax.f32 %v431_v60, 0.0  ;;  %v556_v2 = vmax.f32 %v486_v11, 0.0  ;;  %v765_v60 = vld [vmem:[%s1860_s4 + $0x10] sm:$0xff] }
 0x148   :  { %v375_v41 = vpop.f32.mrb[41].mxu0  ;;  %v381_v46 = vadd.f32 %v1076_v37, %v1604_v34  ;;  %v548_v37 = vmax.f32 %v446_v27, 0.0 }
 0x149   :  { %v600_v45 = vadd.f32 %v599_v33, %v532_v32  ;;  %v376_v47 = vadd.f32 %v1604_v34, %v375_v41  ;;  %v547_v32 = vmax.f32 %v441_v9, 0.0  ;;  %v771_v9 = vld [vmem:[%s1860_s4 + $0x40] sm:$0xff] }
 0x14a   :  { %v535_v55 = vmax.f32 %v381_v46, 0.0 }
 0x14b   :  { %v534_v50 = vmax.f32 %v376_v47, 0.0  ;;  %v601_v53 = vadd.f32 %v600_v45, %v533_v44  ;;  %v550_v45 = vmax.f32 %v456_v38, 0.0  ;;  %v551_v47 = vmax.f32 %v461_v36, 0.0  ;;  %v865_v36 = vld [vmem:[%s1858_s2 + $0x1] ss:$0 sm:$0xff] }
 0x14d   :  { %v602_v56 = vadd.f32 %v601_v53, %v534_v50  ;;  %v552_v53 = vmax.f32 %v466_v51, 0.0 }
 0x14f   :  { %v603_v59 = vadd.f32 %v602_v56, %v535_v55  ;;  %v553_v55 = vmax.f32 %v471_v48, 0.0  ;;  %v481_v56 = vadd.f32 %v1698_v20, %v1604_v34  ;;  %v763_v34 = vld [vmem:[%s1860_s4] sm:$0xff] }
 0x151   :  { %v604_v42 = vadd.f32 %v603_v59, %v536_v57  ;;  %v555_v8 = vmax.f32 %v481_v56, 0.0 }
 0x153   :  { %v605_v5 = vadd.f32 %v604_v42, %v537_v1  ;;  %v590_v1 = vadd.f32 %v589_v61, %v1722_v62 }
 0x155   :  { %v606_v7 = vadd.f32 %v605_v5, %v538_v3  ;;  %v591_v4 = vrot.slane %v590_v1, 2  ;;  %v557_v5 = vmax.f32 %v491_v22, 0.0 }
 0x157   :  { %v607_v12 = vadd.f32 %v606_v7, %v539_v6  ;;  %v592_v6 = vadd.f32 %v591_v4, %v590_v1  ;;  %v866_v4 = vld [vmem:[%s1858_s2 + $0x2] ss:$0 sm:$0xff] }
 0x159   :  { %v608_v15 = vadd.f32 %v607_v12, %v540_v10  ;;  %v593_v52 = vrot.slane %v592_v6, 1 }
 0x15b   :  { %v609_v17 = vadd.f32 %v608_v15, %v541_v14  ;;  %v594_v15 = vadd.f32 %v593_v52, %v592_v6 }
 0x15d   :  { %v610_v19 = vadd.f32 %v609_v17, %v542_v16  ;;  %v632_v62 = vmul.f32 0.00390625, %v594_v15  ;;  %v1237_v17 = vpack.c.bf16 %v764_v35, %v763_v34 }
 0x15f   :  { %v611_v25 = vadd.f32 %v610_v19, %v543_v18  ;;  %v767_v19 = vld [vmem:[%s1860_s4 + $0x20] sm:$0xff] }
 0x161   :  { %v612_v29 = vadd.f32 %v611_v25, %v544_v21  ;;  %v768_v21 = vld [vmem:[%s1860_s4 + $0x28] sm:$0xff]  ;;  %v769_v25 = vld [vmem:[%s1860_s4 + $0x30] sm:$0xff] }
 0x162   :  { %v1243_v13 = vpack.c.bf16 %v768_v21, %v767_v19 }
 0x163   :  { %v613_v31 = vadd.f32 %v612_v29, %v545_v28  ;;  %v770_v28 = vld [vmem:[%s1860_s4 + $0x38] sm:$0xff] }
 0x164   :  { %v1246_v29 = vpack.c.bf16 %v770_v28, %v769_v25 }
 0x165   :  { %v614_v33 = vadd.f32 %v613_v31, %v546_v30  ;;  %v772_v30 = vld [vmem:[%s1860_s4 + $0x48] sm:$0xff]  ;;  %v773_v31 = vld [vmem:[%s1860_s4 + $0x50] sm:$0xff] }
 0x166   :  { %v1249_v27 = vpack.c.bf16 %v772_v30, %v771_v9 }
 0x167   :  { %v615_v41 = vadd.f32 %v614_v33, %v547_v32  ;;  %v1252_v32 = vpack.c.bf16 %v774_v23, %v773_v31  ;;  %v775_v33 = vld [vmem:[%s1860_s4 + $0x60] sm:$0xff] }
 0x169   :  { %v616_v44 = vadd.f32 %v615_v41, %v548_v37  ;;  %v776_v37 = vld [vmem:[%s1860_s4 + $0x68] sm:$0xff]  ;;  %v777_v41 = vld [vmem:[%s1860_s4 + $0x70] sm:$0xff] }
 0x16a   :  { %v1255_v38 = vpack.c.bf16 %v776_v37, %v775_v33 }
 0x16b   :  { %v617_v46 = vadd.f32 %v616_v44, %v549_v43  ;;  %v778_v43 = vld [vmem:[%s1860_s4 + $0x78] sm:$0xff] }
 0x16c   :  { %v1258_v44 = vpack.c.bf16 %v778_v43, %v777_v41 }
 0x16d   :  { %v618_v50 = vadd.f32 %v617_v46, %v550_v45 }
 0x16f   :  { %v619_v54 = vadd.f32 %v618_v50, %v551_v47 }
 0x171   :  { %v620_v57 = vadd.f32 %v619_v54, %v552_v53 }
 0x173   :  { %v621_v59 = vadd.f32 %v620_v57, %v553_v55 }
 0x175   :  { %v622_v42 = vadd.f32 %v621_v59, %v554_v58 }
 0x177   :  { %v623_v3 = vadd.f32 %v622_v42, %v555_v8 }
 0x179   :  { %v624_v20 = vadd.f32 %v623_v3, %v556_v2 }
 0x17b   :  { %v625_v39 = vadd.f32 %v624_v20, %v557_v5  ;;  %v867_v20 = vld [vmem:[%s1858_s2 + $0x3] ss:$0 sm:$0xff] }
 0x17d   :  { %v626_v7 = vrot.slane %v625_v39, 4 }
 0x17f   :  { %v627_v10 = vadd.f32 %v626_v7, %v625_v39 }
 0x181   :  { %v628_v12 = vrot.slane %v627_v10, 2 }
 0x183   :  { %v629_v40 = vadd.f32 %v628_v12, %v627_v10 }
 0x185   :  { %v630_v14 = vrot.slane %v629_v40, 1 }
 0x187   :  { %v631_v49 = vadd.f32 %v630_v14, %v629_v40 }
 0x189   :  { %v633_v16 = vmul.f32 0.00390625, %v631_v49 }
 0x18b   :  { %v657_v0 = vsel %vm656_vm1, %v633_v16, %v632_v62 }
 0x18c   :  { %1143 = vmatmul.mubr.f32.vlgmr.msra.gmra.mrb[22].mxu1 %v657_v0 }
 0x18d   :  { %1177 = vmatprep.mubr.msk.f32.mxu1 %vm1307_vm0, %v1308_v24  ;;  %1238 = vmatpush3.bf16.msra.mxu1 %v1237_v17  ;;  %v766_v24 = vld [vmem:[%s1860_s4 + $0x18] sm:$0xff] }
 0x18e   :  { %1239 = vmatprep.subr.bf16.mxu1 %v1306_v26  ;;  %v1240_v18 = vpack.c.bf16 %v766_v24, %v765_v60 }
 0x191   :  { %1241 = vmatpush3.bf16.msra.mxu1 %v1240_v18 }
 0x192   :  { %1242 = vmatprep.subr.bf16.mxu1 %v1306_v26 }
 0x195   :  { %1244 = vmatpush3.bf16.msra.mxu1 %v1243_v13 }
 0x196   :  { %1245 = vmatprep.subr.bf16.mxu1 %v1306_v26 }
 0x199   :  { %1247 = vmatpush3.bf16.msra.mxu1 %v1246_v29 }
 0x19a   :  { %1248 = vmatprep.subr.bf16.mxu1 %v1306_v26 }
 0x19d   :  { %1250 = vmatpush3.bf16.msra.mxu1 %v1249_v27 }
 0x19e   :  { %1251 = vmatprep.subr.bf16.mxu1 %v1306_v26 }
 0x1a1   :  { %1253 = vmatpush3.bf16.msra.mxu1 %v1252_v32 }
 0x1a2   :  { %1254 = vmatprep.subr.bf16.mxu1 %v1306_v26 }
 0x1a5   :  { %1256 = vmatpush3.bf16.msra.mxu1 %v1255_v38 }
 0x1a6   :  { %1257 = vmatprep.subr.bf16.mxu1 %v1306_v26 }
 0x1a9   :  { %1259 = vmatpush3.bf16.msra.mxu1 %v1258_v44 }
 0x25f   :  { %v725_v45 = vpop.f32.mrb[22].mxu1 }
 0x260   :  { %v726_v51 = vadd.f32 %v865_v36, %v725_v45  ;;  %v1144_v46 = vpop.f32.mrb[23].mxu1 }
 0x262   :  { %v730_v48 = vsel %vm729_vm2, %v726_v51, 0.0 }
 0x263   :  { %v731_v26 = vrot.slane %v730_v48, 4 }
 0x265   :  { %v732_v47 = vadd.f32 %v731_v26, %v730_v48 }
 0x267   :  { %v733_v50 = vrot.slane %v732_v47, 2 }
 0x269   :  { %v734_v53 = vadd.f32 %v733_v50, %v732_v47 }
 0x26b   :  { %v735_v63 = vrot.slane %v734_v53, 1 }
 0x26d   :  { %v736_v54 = vadd.f32 %v735_v63, %v734_v53 }
 0x26f   :  { %v738_v55 = vmul.f32 0.5, %v736_v54 }
 0x271   :  { %v739_v56 = vsub.f32 %v726_v51, %v738_v55 }
 0x273   :  { %v740_v61 = vmul.f32 %v739_v56, %v739_v56 }
 0x275   :  { %v741_v57 = vsel %vm729_vm2, %v740_v61, 0.0 }
 0x276   :  { %v742_v58 = vrot.slane %v741_v57, 4 }
 0x278   :  { %v743_v11 = vadd.f32 %v742_v58, %v741_v57 }
 0x27a   :  { %v744_v59 = vrot.slane %v743_v11, 2 }
 0x27c   :  { %v745_v8 = vadd.f32 %v744_v59, %v743_v11 }
 0x27e   :  { %v746_v1 = vrot.slane %v745_v8, 1 }
 0x280   :  { %v747_v42 = vadd.f32 %v746_v1, %v745_v8 }
 0x282   :  { %v748_v22 = vmul.f32 0.5, %v747_v42 }
 0x284   :  { %v749_v2 = vadd.f32 1e-05, %v748_v22 }
 0x286   :  { %1280 = vrsqrt.f32 %v749_v2 }
 0x290   :  { %v1281_v3 = vpop.eup %1280 }
 0x291   :  { %v751_v5 = vmul.f32 %v1281_v3, %v739_v56 }
 0x293   :  { %v756_v39 = vmul.f32 %v866_v4, %v751_v5 }
 0x295   :  { %v761_v6 = vadd.f32 %v867_v20, %v756_v39 }
 0x297   :  { %v762_v7 = vmax.f32 %v761_v6, 0.0 }
 0x299   :  { %1178 = vmatmul.mubr.f32.vlgmr.msra.gmra.mrb[24].mxu1 %v762_v7 }
 0x36c   :  { %v845_v10 = vpop.f32.mrb[24].mxu1 }
 0x36d   :  { %849 = vst [vmem:[#allocation2] sm:$0x3] %v845_v10  ;;  %v1179_v52 = vpop.f32.mrb[25].mxu1 }
 0x36e   :  { %1293 = shalt.err (!%p1290_p4)
}
 0x36f   :  { %s1294_s2 = scalar_lea.hbm %s1861_s5, 32 }
 0x370   :  { %p1295_p5 = scmp.ne.s32.totalorder %s1861_s5, %s1294_s2  ;;  %p1298_p6 = scmp.lt.u32.totalorder %s1294_s2, %s1861_s5 }
 0x372   :  { %p1300_p7 = pnand %p1298_p6, %p1295_p5 }
 0x374   :  { %1303 = shalt.err (!%p1300_p7)
}
 0x375   :  { %859 = dma.vmem_to_hbm [thread:$0]  %s857_s12, 32, %s1861_s5, [#allocation3]  }
 0x376   :  { %1304 = dma.done.wait [#allocation3], 32  }
 0x377   :  { %1305 = vsyncadd [#allocation3], 4294967264 }
 0x378   :  { %863 = vsyncpa [#allocation3], 1 }

</bundles_post_ra>
